<compile_context>
chip_gen: v5e
topology: v5e:2x2
jax: 0.10.0
libtpu: 0.0.40
codegen_flags: <defaults>
</compile_context>

<pallas_src>
import functools

import jax
import jax.numpy as jnp
from jax.experimental import pallas as pl
from jax.experimental.pallas import tpu as pltpu


def _make_decode_kernel(num_layers: int, hidden_size: int):
    H = hidden_size
    L = num_layers

    def kernel(tok_ref, h0_ref, c0_ref, emb_w0_ref, *refs):
        # refs = [w_hh_0, b_0,
        #         w_ih_1, w_hh_1, b_1, ..., w_ih_{L-1}, w_hh_{L-1}, b_{L-1},
        #         fc_w, fc_b,
        #         pred_ref, h_out_ref, c_out_ref,      (outputs)
        #         h_sc, c_sc]                          (scratch)
        n_layer = 2 + 3 * (L - 1)
        layer_refs = refs[:n_layer]
        fc_w_ref, fc_b_ref = refs[n_layer], refs[n_layer + 1]
        pred_ref = refs[n_layer + 2]
        h_out_ref, c_out_ref = refs[n_layer + 3], refs[n_layer + 4]
        h_sc, c_sc = refs[n_layer + 5], refs[n_layer + 6]

        t = pl.program_id(0)
        n_steps = pl.num_programs(0)
        B = tok_ref.shape[1]
        V = emb_w0_ref.shape[0]

        # Load the initial recurrent state into VMEM scratch on the first step only;
        # it stays on-chip (no HBM round-trip) for the rest of the decode.
        @pl.when(t == 0)
        def _():
            h_sc[...] = h0_ref[...]
            c_sc[...] = c0_ref[...]

        # one-hot(tokens) built directly in bf16 (single compare+select pass on the VPU)
        tok = tok_ref[0]                                              # (B, 1) int32
        vocab_lane = jax.lax.broadcasted_iota(jnp.int32, (B, V), 1)
        onehot = (vocab_lane == tok).astype(jnp.bfloat16)             # (B, V)

        # gate-lane mask (PyTorch gate order i, f, g, o): g lanes get tanh.
        gate_lane = jax.lax.broadcasted_iota(jnp.int32, (B, 4 * H), 1)
        is_g = (gate_lane >= 2 * H) & (gate_lane < 3 * H)

        inp_bf = None  # bf16 input to layers >= 1 (layer 0 uses the folded emb_w0)
        for l in range(L):
            if l == 0:
                w_hh_ref, b_ref = layer_refs[0], layer_refs[1]
                # embedding gather folded offline into the layer-0 input weights
                g_x = jnp.dot(onehot, emb_w0_ref[...],
                              preferred_element_type=jnp.float32)
            else:
                base = 2 + 3 * (l - 1)
                w_ih_ref = layer_refs[base]
                w_hh_ref = layer_refs[base + 1]
                b_ref = layer_refs[base + 2]
                g_x = jnp.dot(inp_bf, w_ih_ref[...],
                              preferred_element_type=jnp.float32)

            h_prev = h_sc[l]                                          # (B, H) f32
            c_prev = c_sc[l]
            g_h = jnp.dot(h_prev.astype(jnp.bfloat16), w_hh_ref[...],
                          preferred_element_type=jnp.float32)
            gates = g_x + g_h + b_ref[...]                            # (B, 4H) f32

            # Single EUP pass: sigmoid everywhere; tanh(x) = 2*sigmoid(2x) - 1 on g lanes.
            pre = jnp.where(is_g, 2.0 * gates, gates)
            sig = jax.nn.sigmoid(pre)
            act = jnp.where(is_g, 2.0 * sig - 1.0, sig)

            i_g = act[:, 0 * H:1 * H]
            f_g = act[:, 1 * H:2 * H]
            g_g = act[:, 2 * H:3 * H]
            o_g = act[:, 3 * H:4 * H]

            c_new = f_g * c_prev + i_g * g_g
            h_new = o_g * jnp.tanh(c_new)

            h_sc[l] = h_new
            c_sc[l] = c_new
            inp_bf = h_new.astype(jnp.bfloat16)
            # inter-layer dropout(p=0.2) is identity in eval mode

        # Lane-dense (B, 128*k) prediction store (unmasked vst); sliced to O outside.
        pred_ref[0] = (jnp.dot(inp_bf, fc_w_ref[...],
                               preferred_element_type=jnp.float32)
                       + fc_b_ref[...])

        # Write the recurrent state back to HBM only once, on the final step.
        @pl.when(t == n_steps - 1)
        def _():
            h_out_ref[...] = h_sc[...]
            c_out_ref[...] = c_sc[...]

    return kernel


def prepare_params(params, num_layers):
    """One-time (outside the decode loop) weight prep:
    fold embedding into layer-0 input weights, pre-transpose matmul weights to (in, 4H),
    pre-sum biases, cast matmul weights to bf16, zero-pad fc to a lane-dense output width."""
    prepped = {}
    prepped["emb_w0"] = jnp.dot(
        params["embedding"], params["w_ih_0"].T).astype(jnp.bfloat16)       # (V, 4H)
    for l in range(num_layers):
        if l > 0:
            prepped[f"w_ih_{l}"] = jnp.transpose(
                params[f"w_ih_{l}"]).astype(jnp.bfloat16)                    # (H, 4H)
        prepped[f"w_hh_{l}"] = jnp.transpose(
            params[f"w_hh_{l}"]).astype(jnp.bfloat16)                        # (H, 4H)
        prepped[f"b_{l}"] = (params[f"b_ih_{l}"]
                             + params[f"b_hh_{l}"]).astype(jnp.float32)      # (1, 4H)
    out_dim = int(params["fc_w"].shape[0])
    padded = max(128, ((out_dim + 127) // 128) * 128)
    pad = padded - out_dim
    prepped["fc_w"] = jnp.pad(
        jnp.transpose(params["fc_w"]).astype(jnp.bfloat16), ((0, 0), (0, pad)))  # (H, OP)
    prepped["fc_b"] = jnp.pad(
        params["fc_b"].astype(jnp.float32), ((0, 0), (0, pad)))                  # (1, OP)
    prepped["out_dim"] = out_dim
    return prepped


def decoder_decode(token_seq, hidden, cell, prepped):
    """Fused multi-step (teacher-forced) decode in ONE pallas_call.
    token_seq: (T, B) int32; hidden/cell: (L, B, H) f32.
    Returns (predictions (T, B, O) f32, final hidden, final cell)."""
    T, B = token_seq.shape
    L, _, H = hidden.shape
    OP = prepped["fc_b"].shape[1]
    O = prepped["out_dim"]

    tok3d = token_seq.reshape(T, B, 1).astype(jnp.int32)

    weight_args = [prepped["emb_w0"], prepped["w_hh_0"], prepped["b_0"]]
    for l in range(1, L):
        weight_args += [prepped[f"w_ih_{l}"], prepped[f"w_hh_{l}"], prepped[f"b_{l}"]]
    weight_args += [prepped["fc_w"], prepped["fc_b"]]

    def resident(shape):
        # Constant block index across the time grid -> copied to VMEM once, never re-DMA'd.
        nd = len(shape)
        return pl.BlockSpec(shape, lambda t, _nd=nd: (0,) * _nd)

    in_specs = (
        [pl.BlockSpec((1, B, 1), lambda t: (t, 0, 0))]   # tokens: one step per grid point
        + [resident((L, B, H)), resident((L, B, H))]     # initial hidden / cell
        + [resident(w.shape) for w in weight_args]       # weights: VMEM-resident
    )

    out_specs = (
        pl.BlockSpec((1, B, OP), lambda t: (t, 0, 0)),   # per-step predictions (lane-dense)
        resident((L, B, H)),                             # final hidden (flushed once at end)
        resident((L, B, H)),                             # final cell
    )

    kernel = _make_decode_kernel(L, H)

    preds_padded, h_out, c_out = pl.pallas_call(
        kernel,
        grid=(T,),
        out_shape=(
            jax.ShapeDtypeStruct((T, B, OP), jnp.float32),
            jax.ShapeDtypeStruct((L, B, H), jnp.float32),
            jax.ShapeDtypeStruct((L, B, H), jnp.float32),
        ),
        in_specs=in_specs,
        out_specs=out_specs,
        scratch_shapes=[pltpu.VMEM((L, B, H), jnp.float32),
                        pltpu.VMEM((L, B, H), jnp.float32)],
        # In-place recurrent state (pair with donate_argnums at the jit boundary).
        input_output_aliases={1: 1, 2: 2},
        compiler_params=pltpu.CompilerParams(
            dimension_semantics=("arbitrary",)),          # time recurrence is sequential
    )(tok3d, hidden, cell, *weight_args)

    return preds_padded[..., :O], h_out, c_out


def decoder_forward(tokens, hidden, cell, prepped):
    """Module-equivalent single decode step (T = 1). tokens: (B,) int32."""
    preds, h_out, c_out = decoder_decode(tokens[None, :], hidden, cell, prepped)
    return preds[0], h_out, c_out


def reference_decode(params, token_seq, hidden, cell, num_layers):
    """Pure-JAX f32 reference matching PyTorch nn.LSTM (eval mode) stepped T times."""
    H = hidden.shape[-1]
    h, c = hidden, cell
    preds_all = []
    for t in range(token_seq.shape[0]):
        inp = params["embedding"][token_seq[t]]                      # (B, E)
        hs, cs = [], []
        for l in range(num_layers):
            b = params[f"b_ih_{l}"] + params[f"b_hh_{l}"]
            gates = (inp @ params[f"w_ih_{l}"].T
                     + h[l] @ params[f"w_hh_{l}"].T + b)             # (B, 4H)
            i = jax.nn.sigmoid(gates[:, 0 * H:1 * H])
            f = jax.nn.sigmoid(gates[:, 1 * H:2 * H])
            g = jnp.tanh(gates[:, 2 * H:3 * H])
            o = jax.nn.sigmoid(gates[:, 3 * H:4 * H])
            c_new = f * c[l] + i * g
            h_new = o * jnp.tanh(c_new)
            hs.append(h_new)
            cs.append(c_new)
            inp = h_new
        h, c = jnp.stack(hs), jnp.stack(cs)
        preds_all.append(inp @ params["fc_w"].T + params["fc_b"])
    return jnp.stack(preds_all), h, c


def init_params(key, vocab_size, embedding_size, hidden_size, num_layers, out_put):
    keys = jax.random.split(key, 4 + 4 * num_layers)
    params = {}
    params["embedding"] = (
        jax.random.normal(keys[0], (vocab_size, embedding_size), jnp.float32) * 0.1
    )
    ki = 1
    for l in range(num_layers):
        in_dim = embedding_size if l == 0 else hidden_size
        params[f"w_ih_{l}"] = (
            jax.random.normal(keys[ki], (4 * hidden_size, in_dim), jnp.float32) * 0.1
        )
        params[f"w_hh_{l}"] = (
            jax.random.normal(keys[ki + 1], (4 * hidden_size, hidden_size), jnp.float32) * 0.1
        )
        params[f"b_ih_{l}"] = (
            jax.random.normal(keys[ki + 2], (1, 4 * hidden_size), jnp.float32) * 0.01
        )
        params[f"b_hh_{l}"] = (
            jax.random.normal(keys[ki + 3], (1, 4 * hidden_size), jnp.float32) * 0.01
        )
        ki += 4
    params["fc_w"] = (
        jax.random.normal(keys[ki], (out_put, hidden_size), jnp.float32) * 0.1
    )
    params["fc_b"] = (
        jax.random.normal(keys[ki + 1], (1, out_put), jnp.float32) * 0.01
    )
    return params


if __name__ == "__main__":
    vocab_size = 64
    embedding_size = 32
    hidden_size = 32
    num_layers = 2
    out_put = 64
    batch = 8
    steps = 8

    root = jax.random.PRNGKey(0)
    k_param, k_tok, k_h, k_c = jax.random.split(root, 4)

    params = init_params(
        k_param, vocab_size, embedding_size, hidden_size, num_layers, out_put
    )
    prepped = prepare_params(params, num_layers)

    token_seq = jax.random.randint(k_tok, (steps, batch), 0, vocab_size, dtype=jnp.int32)
    hidden = jax.random.normal(k_h, (num_layers, batch, hidden_size), jnp.float32)
    cell = jax.random.normal(k_c, (num_layers, batch, hidden_size), jnp.float32)

    # Pure-JAX reference computed BEFORE the kernel call (hidden/cell are donated below).
    ref_preds, ref_h, ref_c = reference_decode(params, token_seq, hidden, cell, num_layers)

    # Donate hidden/cell so input_output_aliases is actually realized in place.
    decode = jax.jit(functools.partial(decoder_decode, prepped=prepped),
                     donate_argnums=(1, 2))
    preds, h_new, c_new = decode(token_seq, hidden, cell)
    jax.block_until_ready((preds, h_new, c_new))

    assert preds.shape == (steps, batch, out_put)
    assert h_new.shape == (num_layers, batch, hidden_size)
    assert c_new.shape == (num_layers, batch, hidden_size)
    assert bool(jnp.all(jnp.isfinite(preds)))

    # bf16 matmul weights vs f32 reference -> loose tolerance.
    assert float(jnp.max(jnp.abs(preds - ref_preds))) < 5e-2
    assert float(jnp.max(jnp.abs(h_new - ref_h))) < 5e-2
    assert float(jnp.max(jnp.abs(c_new - ref_c))) < 5e-2

    # Module-equivalent single-step forward (T = 1).
    step_fn = jax.jit(functools.partial(decoder_forward, prepped=prepped))
    p1, h1, c1 = step_fn(token_seq[0], h_new, c_new)
    jax.block_until_ready((p1, h1, c1))
    assert p1.shape == (batch, out_put)
    assert h1.shape == (num_layers, batch, hidden_size)
    assert c1.shape == (num_layers, batch, hidden_size)

    print("KERNEL_OK")
</pallas_src>

<mosaic_0001>
module attributes {stable_mosaic.version = 11 : i64} {
  func.func @kernel(%arg0: i32, %arg1: memref<1x8x1xi32, #tpu.memory_space<vmem>>, %arg2: memref<2x8x32xf32, #tpu.memory_space<vmem>>, %arg3: memref<2x8x32xf32, #tpu.memory_space<vmem>>, %arg4: memref<64x128xbf16, #tpu.memory_space<vmem>>, %arg5: memref<32x128xbf16, #tpu.memory_space<vmem>>, %arg6: memref<1x128xf32, #tpu.memory_space<vmem>>, %arg7: memref<32x128xbf16, #tpu.memory_space<vmem>>, %arg8: memref<32x128xbf16, #tpu.memory_space<vmem>>, %arg9: memref<1x128xf32, #tpu.memory_space<vmem>>, %arg10: memref<32x128xbf16, #tpu.memory_space<vmem>>, %arg11: memref<1x128xf32, #tpu.memory_space<vmem>>, %arg12: memref<1x8x128xf32, #tpu.memory_space<vmem>>, %arg13: memref<2x8x32xf32, #tpu.memory_space<vmem>>, %arg14: memref<2x8x32xf32, #tpu.memory_space<vmem>>, %arg15: memref<2x8x32xf32, #tpu.memory_space<vmem>>, %arg16: memref<2x8x32xf32, #tpu.memory_space<vmem>>) attributes {dimension_semantics = [#tpu.dimension_semantics<arbitrary>], iteration_bounds = array<i64: 8>, scalar_prefetch = 0 : i64, scratch_operands = 2 : i64, tpu.core_type = #tpu.core_type<tc>, window_params = [{transform_indices = @transform_0, window_bounds = array<i64: 1, 8, 1>}, {pipeline_mode = #tpu.pipeline_mode<synchronous>, transform_indices = @transform_1, window_bounds = array<i64: 2, 8, 32>}, {pipeline_mode = #tpu.pipeline_mode<synchronous>, transform_indices = @transform_2, window_bounds = array<i64: 2, 8, 32>}, {pipeline_mode = #tpu.pipeline_mode<synchronous>, transform_indices = @transform_3, window_bounds = array<i64: 64, 128>}, {pipeline_mode = #tpu.pipeline_mode<synchronous>, transform_indices = @transform_4, window_bounds = array<i64: 32, 128>}, {pipeline_mode = #tpu.pipeline_mode<synchronous>, transform_indices = @transform_5, window_bounds = array<i64: 1, 128>}, {pipeline_mode = #tpu.pipeline_mode<synchronous>, transform_indices = @transform_6, window_bounds = array<i64: 32, 128>}, {pipeline_mode = #tpu.pipeline_mode<synchronous>, transform_indices = @transform_7, window_bounds = array<i64: 32, 128>}, {pipeline_mode = #tpu.pipeline_mode<synchronous>, transform_indices = @transform_8, window_bounds = array<i64: 1, 128>}, {pipeline_mode = #tpu.pipeline_mode<synchronous>, transform_indices = @transform_9, window_bounds = array<i64: 32, 128>}, {pipeline_mode = #tpu.pipeline_mode<synchronous>, transform_indices = @transform_10, window_bounds = array<i64: 1, 128>}, {transform_indices = @transform_11, window_bounds = array<i64: 1, 8, 128>}, {pipeline_mode = #tpu.pipeline_mode<synchronous>, transform_indices = @transform_12, window_bounds = array<i64: 2, 8, 32>}, {pipeline_mode = #tpu.pipeline_mode<synchronous>, transform_indices = @transform_13, window_bounds = array<i64: 2, 8, 32>}]} {
    %c0_i32 = arith.constant 0 : i32
    %0 = arith.cmpi eq, %arg0, %c0_i32 : i32
    %1 = arith.extui %0 : i1 to i32
    %c0_i32_0 = arith.constant 0 : i32
    %2 = arith.cmpi ne, %1, %c0_i32_0 : i32
    scf.if %2 {
      %c0_58 = arith.constant 0 : index
      %c0_59 = arith.constant 0 : index
      %c0_60 = arith.constant 0 : index
      %112 = vector.load %arg2[%c0_58, %c0_59, %c0_60] : memref<2x8x32xf32, #tpu.memory_space<vmem>>, vector<2x8x32xf32>
      %c0_61 = arith.constant 0 : index
      %c0_62 = arith.constant 0 : index
      %c0_63 = arith.constant 0 : index
      %113 = vector.load %arg15[%c0_61, %c0_62, %c0_63] : memref<2x8x32xf32, #tpu.memory_space<vmem>>, vector<2x8x32xf32>
      tpu.vector_store %arg15[%c0_61, %c0_62, %c0_63], %112 {strides = array<i32>} : memref<2x8x32xf32, #tpu.memory_space<vmem>>, vector<2x8x32xf32>,
      %c0_64 = arith.constant 0 : index
      %c0_65 = arith.constant 0 : index
      %c0_66 = arith.constant 0 : index
      %114 = vector.load %arg3[%c0_64, %c0_65, %c0_66] : memref<2x8x32xf32, #tpu.memory_space<vmem>>, vector<2x8x32xf32>
      %c0_67 = arith.constant 0 : index
      %c0_68 = arith.constant 0 : index
      %c0_69 = arith.constant 0 : index
      %115 = vector.load %arg16[%c0_67, %c0_68, %c0_69] : memref<2x8x32xf32, #tpu.memory_space<vmem>>, vector<2x8x32xf32>
      tpu.vector_store %arg16[%c0_67, %c0_68, %c0_69], %114 {strides = array<i32>} : memref<2x8x32xf32, #tpu.memory_space<vmem>>, vector<2x8x32xf32>,
    } else {
    }
    %c0 = arith.constant 0 : index
    %c0_1 = arith.constant 0 : index
    %c0_2 = arith.constant 0 : index
    %3 = vector.load %arg1[%c0, %c0_1, %c0_2] : memref<1x8x1xi32, #tpu.memory_space<vmem>>, vector<1x8x1xi32>
    %4 = vector.shape_cast %3 : vector<1x8x1xi32> to vector<8x1xi32>
    %5 = tpu.iota {dimensions = array<i32: 1>} : vector<8x64xi32>
    %6 = vector.broadcast %4 : vector<8x1xi32> to vector<8x64xi32>
    %7 = arith.cmpi eq, %5, %6 : vector<8x64xi32>
    %8 = arith.extui %7 : vector<8x64xi1> to vector<8x64xi32>
    %9 = arith.sitofp %8 : vector<8x64xi32> to vector<8x64xf32>
    %10 = arith.truncf %9 : vector<8x64xf32> to vector<8x64xbf16>
    %11 = tpu.iota {dimensions = array<i32: 1>} : vector<8x128xi32>
    %c64_i32 = arith.constant 64 : i32
    %12 = vector.broadcast %c64_i32 : i32 to vector<8x128xi32>
    %13 = arith.cmpi sge, %11, %12 : vector<8x128xi32>
    %c96_i32 = arith.constant 96 : i32
    %14 = vector.broadcast %c96_i32 : i32 to vector<8x128xi32>
    %15 = arith.cmpi slt, %11, %14 : vector<8x128xi32>
    %16 = arith.andi %13, %15 : vector<8x128xi1>
    %c0_3 = arith.constant 0 : index
    %c0_4 = arith.constant 0 : index
    %17 = vector.load %arg4[%c0_3, %c0_4] : memref<64x128xbf16, #tpu.memory_space<vmem>>, vector<64x128xbf16>
    %cst = arith.constant dense<0.000000e+00> : vector<8x128xf32>
    %18 = tpu.matmul %10, %17, %cst {dimension_numbers = #tpu.dot_dimension_numbers<[1], [0], [0], [1], [0, 0, 1, 1], [], []>} : vector<8x64xbf16>, vector<64x128xbf16>, vector<8x128xf32> -> vector<8x128xf32>
    %c0_5 = arith.constant 0 : index
    %c0_6 = arith.constant 0 : index
    %c0_7 = arith.constant 0 : index
    %19 = vector.load %arg15[%c0_5, %c0_6, %c0_7] : memref<2x8x32xf32, #tpu.memory_space<vmem>>, vector<1x8x32xf32>
    %20 = vector.shape_cast %19 : vector<1x8x32xf32> to vector<8x32xf32>
    %c0_8 = arith.constant 0 : index
    %c0_9 = arith.constant 0 : index
    %c0_10 = arith.constant 0 : index
    %21 = vector.load %arg16[%c0_8, %c0_9, %c0_10] : memref<2x8x32xf32, #tpu.memory_space<vmem>>, vector<1x8x32xf32>
    %22 = vector.shape_cast %21 : vector<1x8x32xf32> to vector<8x32xf32>
    %23 = arith.truncf %20 : vector<8x32xf32> to vector<8x32xbf16>
    %c0_11 = arith.constant 0 : index
    %c0_12 = arith.constant 0 : index
    %24 = vector.load %arg5[%c0_11, %c0_12] : memref<32x128xbf16, #tpu.memory_space<vmem>>, vector<32x128xbf16>
    %cst_13 = arith.constant dense<0.000000e+00> : vector<8x128xf32>
    %25 = tpu.matmul %23, %24, %cst_13 {dimension_numbers = #tpu.dot_dimension_numbers<[1], [0], [0], [1], [0, 0, 1, 1], [], []>} : vector<8x32xbf16>, vector<32x128xbf16>, vector<8x128xf32> -> vector<8x128xf32>
    %26 = arith.addf %18, %25 : vector<8x128xf32>
    %c0_14 = arith.constant 0 : index
    %c0_15 = arith.constant 0 : index
    %27 = vector.load %arg6[%c0_14, %c0_15] : memref<1x128xf32, #tpu.memory_space<vmem>>, vector<1x128xf32>
    %28 = vector.broadcast %27 : vector<1x128xf32> to vector<8x128xf32>
    %29 = arith.addf %26, %28 : vector<8x128xf32>
    %cst_16 = arith.constant 2.000000e+00 : f32
    %30 = vector.broadcast %cst_16 : f32 to vector<8x128xf32>
    %31 = arith.mulf %30, %29 : vector<8x128xf32>
    %32 = arith.select %16, %31, %29 : vector<8x128xi1>, vector<8x128xf32>
    %33 = arith.negf %32 : vector<8x128xf32>
    %34 = math.exp %33 : vector<8x128xf32>
    %cst_17 = arith.constant 1.000000e+00 : f32
    %35 = vector.broadcast %cst_17 : f32 to vector<8x128xf32>
    %36 = arith.addf %35, %34 : vector<8x128xf32>
    %37 = arith.divf %35, %36 : vector<8x128xf32>
    %cst_18 = arith.constant 2.000000e+00 : f32
    %38 = vector.broadcast %cst_18 : f32 to vector<8x128xf32>
    %39 = arith.mulf %38, %37 : vector<8x128xf32>
    %cst_19 = arith.constant 1.000000e+00 : f32
    %40 = vector.broadcast %cst_19 : f32 to vector<8x128xf32>
    %41 = arith.subf %39, %40 : vector<8x128xf32>
    %42 = arith.select %16, %41, %37 : vector<8x128xi1>, vector<8x128xf32>
    %43 = vector.extract_strided_slice %42 {offsets = [0, 0], sizes = [8, 32], strides = [1, 1]} : vector<8x128xf32> to vector<8x32xf32>
    %44 = vector.extract_strided_slice %42 {offsets = [0, 32], sizes = [8, 32], strides = [1, 1]} : vector<8x128xf32> to vector<8x32xf32>
    %45 = vector.extract_strided_slice %42 {offsets = [0, 64], sizes = [8, 32], strides = [1, 1]} : vector<8x128xf32> to vector<8x32xf32>
    %46 = vector.extract_strided_slice %42 {offsets = [0, 96], sizes = [8, 32], strides = [1, 1]} : vector<8x128xf32> to vector<8x32xf32>
    %47 = arith.mulf %44, %22 : vector<8x32xf32>
    %48 = arith.mulf %43, %45 : vector<8x32xf32>
    %49 = arith.addf %47, %48 : vector<8x32xf32>
    %50 = math.tanh %49 : vector<8x32xf32>
    %51 = arith.mulf %46, %50 : vector<8x32xf32>
    %c0_20 = arith.constant 0 : index
    %c0_21 = arith.constant 0 : index
    %c0_22 = arith.constant 0 : index
    %52 = vector.load %arg15[%c0_20, %c0_21, %c0_22] : memref<2x8x32xf32, #tpu.memory_space<vmem>>, vector<1x8x32xf32>
    %53 = vector.shape_cast %52 : vector<1x8x32xf32> to vector<8x32xf32>
    %54 = vector.shape_cast %51 : vector<8x32xf32> to vector<1x8x32xf32>
    tpu.vector_store %arg15[%c0_20, %c0_21, %c0_22], %54 {strides = array<i32>} : memref<2x8x32xf32, #tpu.memory_space<vmem>>, vector<1x8x32xf32>,
    %c0_23 = arith.constant 0 : index
    %c0_24 = arith.constant 0 : index
    %c0_25 = arith.constant 0 : index
    %55 = vector.load %arg16[%c0_23, %c0_24, %c0_25] : memref<2x8x32xf32, #tpu.memory_space<vmem>>, vector<1x8x32xf32>
    %56 = vector.shape_cast %55 : vector<1x8x32xf32> to vector<8x32xf32>
    %57 = vector.shape_cast %49 : vector<8x32xf32> to vector<1x8x32xf32>
    tpu.vector_store %arg16[%c0_23, %c0_24, %c0_25], %57 {strides = array<i32>} : memref<2x8x32xf32, #tpu.memory_space<vmem>>, vector<1x8x32xf32>,
    %58 = arith.truncf %51 : vector<8x32xf32> to vector<8x32xbf16>
    %c0_26 = arith.constant 0 : index
    %c0_27 = arith.constant 0 : index
    %59 = vector.load %arg7[%c0_26, %c0_27] : memref<32x128xbf16, #tpu.memory_space<vmem>>, vector<32x128xbf16>
    %cst_28 = arith.constant dense<0.000000e+00> : vector<8x128xf32>
    %60 = tpu.matmul %58, %59, %cst_28 {dimension_numbers = #tpu.dot_dimension_numbers<[1], [0], [0], [1], [0, 0, 1, 1], [], []>} : vector<8x32xbf16>, vector<32x128xbf16>, vector<8x128xf32> -> vector<8x128xf32>
    %c1 = arith.constant 1 : index
    %c0_29 = arith.constant 0 : index
    %c0_30 = arith.constant 0 : index
    %61 = vector.load %arg15[%c1, %c0_29, %c0_30] : memref<2x8x32xf32, #tpu.memory_space<vmem>>, vector<1x8x32xf32>
    %62 = vector.shape_cast %61 : vector<1x8x32xf32> to vector<8x32xf32>
    %c1_31 = arith.constant 1 : index
    %c0_32 = arith.constant 0 : index
    %c0_33 = arith.constant 0 : index
    %63 = vector.load %arg16[%c1_31, %c0_32, %c0_33] : memref<2x8x32xf32, #tpu.memory_space<vmem>>, vector<1x8x32xf32>
    %64 = vector.shape_cast %63 : vector<1x8x32xf32> to vector<8x32xf32>
    %65 = arith.truncf %62 : vector<8x32xf32> to vector<8x32xbf16>
    %c0_34 = arith.constant 0 : index
    %c0_35 = arith.constant 0 : index
    %66 = vector.load %arg8[%c0_34, %c0_35] : memref<32x128xbf16, #tpu.memory_space<vmem>>, vector<32x128xbf16>
    %cst_36 = arith.constant dense<0.000000e+00> : vector<8x128xf32>
    %67 = tpu.matmul %65, %66, %cst_36 {dimension_numbers = #tpu.dot_dimension_numbers<[1], [0], [0], [1], [0, 0, 1, 1], [], []>} : vector<8x32xbf16>, vector<32x128xbf16>, vector<8x128xf32> -> vector<8x128xf32>
    %68 = arith.addf %60, %67 : vector<8x128xf32>
    %c0_37 = arith.constant 0 : index
    %c0_38 = arith.constant 0 : index
    %69 = vector.load %arg9[%c0_37, %c0_38] : memref<1x128xf32, #tpu.memory_space<vmem>>, vector<1x128xf32>
    %70 = vector.broadcast %69 : vector<1x128xf32> to vector<8x128xf32>
    %71 = arith.addf %68, %70 : vector<8x128xf32>
    %cst_39 = arith.constant 2.000000e+00 : f32
    %72 = vector.broadcast %cst_39 : f32 to vector<8x128xf32>
    %73 = arith.mulf %72, %71 : vector<8x128xf32>
    %74 = arith.select %16, %73, %71 : vector<8x128xi1>, vector<8x128xf32>
    %75 = arith.negf %74 : vector<8x128xf32>
    %76 = math.exp %75 : vector<8x128xf32>
    %cst_40 = arith.constant 1.000000e+00 : f32
    %77 = vector.broadcast %cst_40 : f32 to vector<8x128xf32>
    %78 = arith.addf %77, %76 : vector<8x128xf32>
    %79 = arith.divf %77, %78 : vector<8x128xf32>
    %cst_41 = arith.constant 2.000000e+00 : f32
    %80 = vector.broadcast %cst_41 : f32 to vector<8x128xf32>
    %81 = arith.mulf %80, %79 : vector<8x128xf32>
    %cst_42 = arith.constant 1.000000e+00 : f32
    %82 = vector.broadcast %cst_42 : f32 to vector<8x128xf32>
    %83 = arith.subf %81, %82 : vector<8x128xf32>
    %84 = arith.select %16, %83, %79 : vector<8x128xi1>, vector<8x128xf32>
    %85 = vector.extract_strided_slice %84 {offsets = [0, 0], sizes = [8, 32], strides = [1, 1]} : vector<8x128xf32> to vector<8x32xf32>
    %86 = vector.extract_strided_slice %84 {offsets = [0, 32], sizes = [8, 32], strides = [1, 1]} : vector<8x128xf32> to vector<8x32xf32>
    %87 = vector.extract_strided_slice %84 {offsets = [0, 64], sizes = [8, 32], strides = [1, 1]} : vector<8x128xf32> to vector<8x32xf32>
    %88 = vector.extract_strided_slice %84 {offsets = [0, 96], sizes = [8, 32], strides = [1, 1]} : vector<8x128xf32> to vector<8x32xf32>
    %89 = arith.mulf %86, %64 : vector<8x32xf32>
    %90 = arith.mulf %85, %87 : vector<8x32xf32>
    %91 = arith.addf %89, %90 : vector<8x32xf32>
    %92 = math.tanh %91 : vector<8x32xf32>
    %93 = arith.mulf %88, %92 : vector<8x32xf32>
    %c1_43 = arith.constant 1 : index
    %c0_44 = arith.constant 0 : index
    %c0_45 = arith.constant 0 : index
    %94 = vector.load %arg15[%c1_43, %c0_44, %c0_45] : memref<2x8x32xf32, #tpu.memory_space<vmem>>, vector<1x8x32xf32>
    %95 = vector.shape_cast %94 : vector<1x8x32xf32> to vector<8x32xf32>
    %96 = vector.shape_cast %93 : vector<8x32xf32> to vector<1x8x32xf32>
    tpu.vector_store %arg15[%c1_43, %c0_44, %c0_45], %96 {strides = array<i32>} : memref<2x8x32xf32, #tpu.memory_space<vmem>>, vector<1x8x32xf32>,
    %c1_46 = arith.constant 1 : index
    %c0_47 = arith.constant 0 : index
    %c0_48 = arith.constant 0 : index
    %97 = vector.load %arg16[%c1_46, %c0_47, %c0_48] : memref<2x8x32xf32, #tpu.memory_space<vmem>>, vector<1x8x32xf32>
    %98 = vector.shape_cast %97 : vector<1x8x32xf32> to vector<8x32xf32>
    %99 = vector.shape_cast %91 : vector<8x32xf32> to vector<1x8x32xf32>
    tpu.vector_store %arg16[%c1_46, %c0_47, %c0_48], %99 {strides = array<i32>} : memref<2x8x32xf32, #tpu.memory_space<vmem>>, vector<1x8x32xf32>,
    %100 = arith.truncf %93 : vector<8x32xf32> to vector<8x32xbf16>
    %c0_49 = arith.constant 0 : index
    %c0_50 = arith.constant 0 : index
    %101 = vector.load %arg10[%c0_49, %c0_50] : memref<32x128xbf16, #tpu.memory_space<vmem>>, vector<32x128xbf16>
    %cst_51 = arith.constant dense<0.000000e+00> : vector<8x128xf32>
    %102 = tpu.matmul %100, %101, %cst_51 {dimension_numbers = #tpu.dot_dimension_numbers<[1], [0], [0], [1], [0, 0, 1, 1], [], []>} : vector<8x32xbf16>, vector<32x128xbf16>, vector<8x128xf32> -> vector<8x128xf32>
    %c0_52 = arith.constant 0 : index
    %c0_53 = arith.constant 0 : index
    %103 = vector.load %arg11[%c0_52, %c0_53] : memref<1x128xf32, #tpu.memory_space<vmem>>, vector<1x128xf32>
    %104 = vector.broadcast %103 : vector<1x128xf32> to vector<8x128xf32>
    %105 = arith.addf %102, %104 : vector<8x128xf32>
    %c0_54 = arith.constant 0 : index
    %c0_55 = arith.constant 0 : index
    %c0_56 = arith.constant 0 : index
    %106 = vector.load %arg12[%c0_54, %c0_55, %c0_56] : memref<1x8x128xf32, #tpu.memory_space<vmem>>, vector<1x8x128xf32>
    %107 = vector.shape_cast %106 : vector<1x8x128xf32> to vector<8x128xf32>
    %108 = vector.shape_cast %105 : vector<8x128xf32> to vector<1x8x128xf32>
    tpu.vector_store %arg12[%c0_54, %c0_55, %c0_56], %108 {strides = array<i32>} : memref<1x8x128xf32, #tpu.memory_space<vmem>>, vector<1x8x128xf32>,
    %c7_i32 = arith.constant 7 : i32
    %109 = arith.cmpi eq, %arg0, %c7_i32 : i32
    %110 = arith.extui %109 : i1 to i32
    %c0_i32_57 = arith.constant 0 : i32
    %111 = arith.cmpi ne, %110, %c0_i32_57 : i32
    scf.if %111 {
      %c0_58 = arith.constant 0 : index
      %c0_59 = arith.constant 0 : index
      %c0_60 = arith.constant 0 : index
      %112 = vector.load %arg15[%c0_58, %c0_59, %c0_60] : memref<2x8x32xf32, #tpu.memory_space<vmem>>, vector<2x8x32xf32>
      %c0_61 = arith.constant 0 : index
      %c0_62 = arith.constant 0 : index
      %c0_63 = arith.constant 0 : index
      %113 = vector.load %arg13[%c0_61, %c0_62, %c0_63] : memref<2x8x32xf32, #tpu.memory_space<vmem>>, vector<2x8x32xf32>
      tpu.vector_store %arg13[%c0_61, %c0_62, %c0_63], %112 {strides = array<i32>} : memref<2x8x32xf32, #tpu.memory_space<vmem>>, vector<2x8x32xf32>,
      %c0_64 = arith.constant 0 : index
      %c0_65 = arith.constant 0 : index
      %c0_66 = arith.constant 0 : index
      %114 = vector.load %arg16[%c0_64, %c0_65, %c0_66] : memref<2x8x32xf32, #tpu.memory_space<vmem>>, vector<2x8x32xf32>
      %c0_67 = arith.constant 0 : index
      %c0_68 = arith.constant 0 : index
      %c0_69 = arith.constant 0 : index
      %115 = vector.load %arg14[%c0_67, %c0_68, %c0_69] : memref<2x8x32xf32, #tpu.memory_space<vmem>>, vector<2x8x32xf32>
      tpu.vector_store %arg14[%c0_67, %c0_68, %c0_69], %114 {strides = array<i32>} : memref<2x8x32xf32, #tpu.memory_space<vmem>>, vector<2x8x32xf32>,
    } else {
    }
    return
  }
  func.func @transform_0(%arg0: i32) -> (i32, i32, i32) {
    %c0_i32 = arith.constant 0 : i32
    %c0_i32_0 = arith.constant 0 : i32
    %c0_i32_1 = arith.constant 0 : i32
    return %arg0, %c0_i32, %c0_i32_0 : i32, i32, i32
  }
  func.func @transform_1(%arg0: i32) -> (i32, i32, i32) {
    %c0_i32 = arith.constant 0 : i32
    %c0_i32_0 = arith.constant 0 : i32
    %c0_i32_1 = arith.constant 0 : i32
    %c0_i32_2 = arith.constant 0 : i32
    return %c0_i32, %c0_i32_0, %c0_i32_1 : i32, i32, i32
  }
  func.func @transform_2(%arg0: i32) -> (i32, i32, i32) {
    %c0_i32 = arith.constant 0 : i32
    %c0_i32_0 = arith.constant 0 : i32
    %c0_i32_1 = arith.constant 0 : i32
    %c0_i32_2 = arith.constant 0 : i32
    return %c0_i32, %c0_i32_0, %c0_i32_1 : i32, i32, i32
  }
  func.func @transform_3(%arg0: i32) -> (i32, i32) {
    %c0_i32 = arith.constant 0 : i32
    %c0_i32_0 = arith.constant 0 : i32
    %c0_i32_1 = arith.constant 0 : i32
    return %c0_i32, %c0_i32_0 : i32, i32
  }
  func.func @transform_4(%arg0: i32) -> (i32, i32) {
    %c0_i32 = arith.constant 0 : i32
    %c0_i32_0 = arith.constant 0 : i32
    %c0_i32_1 = arith.constant 0 : i32
    return %c0_i32, %c0_i32_0 : i32, i32
  }
  func.func @transform_5(%arg0: i32) -> (i32, i32) {
    %c0_i32 = arith.constant 0 : i32
    %c0_i32_0 = arith.constant 0 : i32
    %c0_i32_1 = arith.constant 0 : i32
    return %c0_i32, %c0_i32_0 : i32, i32
  }
  func.func @transform_6(%arg0: i32) -> (i32, i32) {
    %c0_i32 = arith.constant 0 : i32
    %c0_i32_0 = arith.constant 0 : i32
    %c0_i32_1 = arith.constant 0 : i32
    return %c0_i32, %c0_i32_0 : i32, i32
  }
  func.func @transform_7(%arg0: i32) -> (i32, i32) {
    %c0_i32 = arith.constant 0 : i32
    %c0_i32_0 = arith.constant 0 : i32
    %c0_i32_1 = arith.constant 0 : i32
    return %c0_i32, %c0_i32_0 : i32, i32
  }
  func.func @transform_8(%arg0: i32) -> (i32, i32) {
    %c0_i32 = arith.constant 0 : i32
    %c0_i32_0 = arith.constant 0 : i32
    %c0_i32_1 = arith.constant 0 : i32
    return %c0_i32, %c0_i32_0 : i32, i32
  }
  func.func @transform_9(%arg0: i32) -> (i32, i32) {
    %c0_i32 = arith.constant 0 : i32
    %c0_i32_0 = arith.constant 0 : i32
    %c0_i32_1 = arith.constant 0 : i32
    return %c0_i32, %c0_i32_0 : i32, i32
  }
  func.func @transform_10(%arg0: i32) -> (i32, i32) {
    %c0_i32 = arith.constant 0 : i32
    %c0_i32_0 = arith.constant 0 : i32
    %c0_i32_1 = arith.constant 0 : i32
    return %c0_i32, %c0_i32_0 : i32, i32
  }
  func.func @transform_11(%arg0: i32) -> (i32, i32, i32) {
    %c0_i32 = arith.constant 0 : i32
    %c0_i32_0 = arith.constant 0 : i32
    %c0_i32_1 = arith.constant 0 : i32
    return %arg0, %c0_i32, %c0_i32_0 : i32, i32, i32
  }
  func.func @transform_12(%arg0: i32) -> (i32, i32, i32) {
    %c0_i32 = arith.constant 0 : i32
    %c0_i32_0 = arith.constant 0 : i32
    %c0_i32_1 = arith.constant 0 : i32
    %c0_i32_2 = arith.constant 0 : i32
    return %c0_i32, %c0_i32_0, %c0_i32_1 : i32, i32, i32
  }
  func.func @transform_13(%arg0: i32) -> (i32, i32, i32) {
    %c0_i32 = arith.constant 0 : i32
    %c0_i32_0 = arith.constant 0 : i32
    %c0_i32_1 = arith.constant 0 : i32
    %c0_i32_2 = arith.constant 0 : i32
    return %c0_i32, %c0_i32_0, %c0_i32_1 : i32, i32, i32
  }
}

</mosaic_0001>

<bundles_post_ra>
// kernel: decoder_decode.1
= control target key start
LH: loop header
LB: loop body
LE: loop exit
PB: predicated region body
PF: predicated region fallthrough
CT: control target
= control target key end

     0   :  { %s1755_s0 = inlined_call_operand.vmem [shape: s32[8,8,1], index: 0, kind: input, shape index: {}]   ;;  %s1756_s1 = inlined_call_operand.vmem [shape: f32[2,8,32], index: 1, kind: input, shape index: {}, may-alias: {1,12}]   ;;  %s1757_s2 = inlined_call_operand.vmem [shape: f32[2,8,32], index: 2, kind: input, shape index: {}, may-alias: {2,13}]   ;;  %s1758_s3 = inlined_call_operand.vmem [shape: bf16[64,128], index: 3, kind: input, shape index: {}]   ;;  %s1759_s4 = inlined_call_operand.hbm [shape: bf16[32,128], index: 4, kind: input, shape index: {}]   ;;  %s1760_s5 = inlined_call_operand.hbm [shape: f32[1,128], index: 5, kind: input, shape index: {}]   ;;  %s1761_s6 = inlined_call_operand.hbm [shape: bf16[32,128], index: 6, kind: input, shape index: {}]   ;;  %s1762_s7 = inlined_call_operand.hbm [shape: bf16[32,128], index: 7, kind: input, shape index: {}]   ;;  %s1763_s8 = inlined_call_operand.hbm [shape: f32[1,128], index: 8, kind: input, shape index: {}]   ;;  %s1764_s9 = inlined_call_operand.vmem [shape: bf16[32,128], index: 9, kind: input, shape index: {}]   ;;  %s1765_s10 = inlined_call_operand.vmem [shape: f32[1,128], index: 10, kind: input, shape index: {}]   ;;  %s1766_s11 = inlined_call_operand.hbm [shape: f32[8,8,128], index: 11, kind: output, shape index: {0}]   ;;  %s1767_s12 = inlined_call_operand.vmem [shape: f32[2,8,32], index: 12, kind: output, shape index: {1}, may-alias: {1,12}]   ;;  %s1768_s13 = inlined_call_operand.vmem [shape: f32[2,8,32], index: 13, kind: output, shape index: {2}, may-alias: {2,13}]  }
   0x1   :  { %1775 = sst [smem:[#allocation24_spill]] %s1759_s4 }
   0x2   :  { %1776 = sst [smem:[#allocation25_spill]] %s1760_s5 }
   0x3   :  { %1777 = sst [smem:[#allocation26_spill]] %s1762_s7 }
   0x4   :  { %19 = vsyncpa [#allocation5], 0 }
   0x5   :  { %20 = vsyncpa [#allocation8], 0 }
   0x6   :  { %21 = vsyncpa [#allocation11], 0 }
   0x7   :  { %22 = vsyncpa [#allocation6], 0 }
   0x8   :  { %24 = vsyncpa [#allocation6 + $0x1], 0  ;;  %s1518_s25 = smov 0   ;;  %s1520_s26 = smov 0  }
   0x9   :  { %s1522_s27 = smov 0   ;;  %s1524_s28 = smov 0  }
   0xa LB: > { %1778 = sst [smem:[#allocation18_spill]] %s1422_s25  ;;  %s1539_s29 = sadd.s32 4294967295, %s1434_s28   ;;  %s1434_s28 = sphi %s1524_s28, %s1796_s28   ;;  %s1430_s27 = sphi %s1522_s27, %s1798_s27   ;;  %s1426_s26 = sphi %s1520_s26, %s1800_s26   ;;  %s1422_s25 = sphi %s1518_s25, %s1799_s25  }
   0xb   : > { %1779 = sst [smem:[#allocation19_spill]] %s1430_s27  ;;  %s1005_s30 = sadd.s32 4294967294, %s1434_s28  }
   0xc   : > { %1780 = sst [smem:[#allocation20_spill]] %s1434_s28  ;;  %s1543_s14 = sadd.s32 1, %s1434_s28  }
   0xd   : > { %1781 = sst [smem:[#allocation21_spill]] %s1543_s14  ;;  %s273_s15 = sadd.s32 1, %s1430_s27 }
   0xe   : > { %s270_s16 = ssub.s32 %s1434_s28, %s1543_s14  ;;  %p283_p0 = scmp.ne.s32.totalorder %s1430_s27, %s1426_s26 }
   0xf   : > { %p271_p1 = scmp.eq.s32.totalorder %s270_s16, 0  ;;  %p284_p2 = scmp.eq.s32.totalorder %s1539_s29, 7 }
  0x10   : > { %p289_p3 = scmp.ne.s32.totalorder %s1426_s26, %s1422_s25  ;;  %p290_p4 = scmp.eq.s32.totalorder %s1005_s30, 7 }
  0x11   : > { %s1554_s17 = scalar_select %p271_p1, %s1430_s27, %s273_s15  }
  0x12   : > { %p1556_p5 = por %p284_p2, %p283_p0  ;;  %p1560_p6 = por %p290_p4, %p289_p3 }
  0x13   : > { %1782 = sst [smem:[#allocation22_spill]] %s1554_s17  ;;  %p1006_p7 = scmp.ge.s32.totalorder %s1434_s28, 1 }
  0x14   : > { %s1784_s19 = scalar_select %p1560_p6, 1, 0 }
  0x15   : > { %p339_p8 = scmp.lt.s32.totalorder %s1434_s28, 9  ;;  %p1007_p9 = scmp.ne.s32.totalorder %s1539_s29, 0 }
  0x16   : > { %1785 = sst [smem:[#allocation23_spill]] %s1784_s19  ;;  %p1139_p10 = scmp.eq.s32.totalorder %s1539_s29, 0 }
  0x17   : > { %p1568_p11 = pnand %p1006_p7, %p339_p8  ;;  %s1787_s5 = sld [smem:[#allocation25_spill]] }
  0x18   : > { %s1436_s24 = smov [#allocation7]   ;;  %s1789_s7 = sld [smem:[#allocation26_spill]] }
  0x19   : > { %p1119_p12 = pneg %p1568_p11  ;;  %s376_s30 = sshll.u32 %s1436_s24, 4  ;;  %s377_s30 = int_to_ptr.vmem [resolvable:$true] %s376_s30 }
  0x1a   : > { %s1437_s21 = smov [#allocation10]   ;;  %s1790_s4 = sld [smem:[#allocation24_spill]] }
  0x1b   : > { %p1579_p13 = pnand %p1139_p10, %p1119_p12  ;;  %s401_s22 = sshll.u32 %s1437_s21, 4  ;;  %s402_s22 = int_to_ptr.vmem [resolvable:$true] %s401_s22 }
  0x1c   : > { %s1438_s19 = smov 64   ;;  %s1439_s25 = smov 4  }
  0x1d   : > { %s374_s23 = sshll.u32 %s1787_s5, 4  ;;  %s1440_s28 = smov [#allocation4]   ;;  %s375_s23 = int_to_ptr.hbm [resolvable:$true] %s374_s23 }
  0x1e   : > { %s399_s27 = sshll.u32 %s1789_s7, 4  ;;  %s385_s7 = sshll.u32 %s1761_s6, 4  ;;  %s400_s27 = int_to_ptr.hbm [resolvable:$true] %s399_s27  ;;  %s386_s7 = int_to_ptr.hbm [resolvable:$true] %s385_s7 }
  0x1f   : > { %1125 = dma.hbm_to_vmem [thread:$0]  (!%p1579_p13), %s375_s23, 16, %s377_s30, [#allocation8]  }
  0x20   : > { %s359_s14 = sshll.u32 %s1790_s4, 4  ;;  %s361_s23 = sshll.u32 %s1440_s28, 4  ;;  %s360_s14 = int_to_ptr.hbm [resolvable:$true] %s359_s14  ;;  %s362_s23 = int_to_ptr.vmem [resolvable:$true] %s361_s23 }
  0x21   : > { %1131 = dma.hbm_to_vmem [thread:$0]  (!%p1579_p13), %s400_s27, 256, %s402_s22, [#allocation11], %s1438_s19, %s1438_s19, %s1439_s25  }
  0x22   : > { %1122 = dma.hbm_to_vmem [thread:$0]  (!%p1579_p13), %s360_s14, 256, %s362_s23, [#allocation5], %s1438_s19, %s1438_s19, %s1439_s25  }
  0x23   : > { %s1441_s5 = smov [#allocation9]   ;;  %s414_s4 = sshll.u32 %s1763_s8, 4  ;;  %s415_s4 = int_to_ptr.hbm [resolvable:$true] %s414_s4 }
  0x24   : > { %s387_s30 = sshll.u32 %s1441_s5, 4  ;;  %s1442_s27 = smov [#allocation12]   ;;  %s388_s30 = int_to_ptr.vmem [resolvable:$true] %s387_s30 }
  0x25   : > { %1128 = dma.hbm_to_vmem [thread:$0]  (!%p1579_p13), %s386_s7, 256, %s388_s30, [#allocation8], %s1438_s19, %s1438_s19, %s1439_s25  }
  0x26   : > { %s416_s22 = sshll.u32 %s1442_s27, 4  ;;  %442 = sbr.rel (%p1568_p11) target bundleno = 1550 (0x60e), region = 64  ;;  %s417_s22 = int_to_ptr.vmem [resolvable:$true] %s416_s22 }
  0x27   : > { %1134 = dma.hbm_to_vmem [thread:$0]  (!%p1579_p13), %s415_s4, 16, %s417_s22, [#allocation11]  }
  0x2b   : > { %1405 = dma.done.wait (%p1139_p10), [#allocation5], 256  }
  0x2c   : > { %1407 = vsyncadd (%p1139_p10), [#allocation5], 4294967040 }
  0x2d   : > { %1409 = dma.done.wait (%p1139_p10), [#allocation8], 272  }
  0x2e   : > { %1411 = vsyncadd (%p1139_p10), [#allocation8], 4294967024 }
  0x2f   : > { %1413 = dma.done.wait (%p1139_p10), [#allocation11], 272  }
  0x30   : > { %1415 = vsyncadd (%p1139_p10), [#allocation11], 4294967024  ;;  %s499_s4 = sand.u32 1, %s1426_s26   ;;  %p506_p0 = scmp.lt.s32.totalorder %s1539_s29, 7 }
  0x31   : > { %s1623_s7 = sshll.u32 %s499_s4, 3  ;;  %514 = sbr.rel (%p1007_p9) target bundleno = 59 (0x3b), region = 88 }
  0x32   : > { %s507_s25 = scalar_select %p506_p0, %s1539_s29, 7 }
  0x33   : > { %s501_s15 = scalar_lea.vmem [#allocation13], %s1623_s7 }
  0x34   : > { %s1020_s28 = sshll.u32 %s507_s25, 3 }
  0x35   : > { %s509_s20 = scalar_lea.vmem %s1755_s0, %s1020_s28 }
  0x36   : > { %v515_v0 = vld [vmem:[%s1756_s1] sm:$0xff]  ;;  %vm517_vm0 = vcmask 261120   ;;  %v516_v1 = vld [vmem:[%s1756_s1 + $0x8] sm:$0xff] }
  0x37   : > { %v520_v2 = vld [vmem:[%s1757_s2] sm:$0xff]  ;;  %518 = vst.msk [vmem:[#allocation2] sm:$0xff] %vm517_vm0, %v515_v0  ;;  %v521_v3 = vld [vmem:[%s1757_s2 + $0x8] sm:$0xff] }
  0x38   : > { %519 = vst.msk [vmem:[#allocation2 + $0x8] sm:$0xff] %vm517_vm0, %v516_v1 }
  0x39   : > { %522 = vst.msk [vmem:[#allocation3] sm:$0xff] %vm517_vm0, %v520_v2 }
  0x3a   : > { %523 = vst.msk [vmem:[#allocation3 + $0x8] sm:$0xff] %vm517_vm0, %v521_v3 }
  0x3b PF: > { %v524_v4 = vld [vmem:[%s509_s20] sm:$0xff]  ;;  %v1090_v5 = vld [vmem:[#allocation4 + $0x8] sm:$0xff]  ;;  %v1088_v6 = vld [vmem:[%s1758_s3 + $0x18] sm:$0xff]  ;;  %v1443_v7 = vmov 0   ;;  %vm564_vm1 = vcmask 261120   ;;  %s1444_s23 = smov 32   ;;  %v525_v15 = vlaneseq }
  0x3c   : > { %1194 = vset.pattern.permute.xlu0 %v1443_v7  ;;  %v1089_v8 = vld [vmem:[#allocation4] sm:$0xff]  ;;  %574 = vmatpush.bf16.msra.mxu0 %v1090_v5  ;;  %v1087_v10 = vld [vmem:[%s1758_s3 + $0x10] sm:$0xff]  ;;  %v1086_v12 = vld [vmem:[%s1758_s3 + $0x8] sm:$0xff]  ;;  %v1445_v18 = vmov 0.0   ;;  %vm605_vm3 = vcmask 523264   ;;  %s1446_s5 = smov 64  }
  0x3d   : > { %528 = vperm.xlu0 %1194, %v524_v4   ;;  %613 = vmatpush.bf16.msra.mxu1 %v1088_v6  ;;  %v1085_v13 = vld [vmem:[%s1758_s3] sm:$0xff]  ;;  %v526_v16 = vand.u32 127, %v525_v15  ;;  %v1195_v23 = vld [vmem:[#allocation7] ss:$0 sm:$0xff]  ;;  %v1091_v58 = vld [vmem:[#allocation9] sm:$0xff]  ;;  %s1447_s30 = smov 96  }
  0x3e   : > { %v545_v9 = vld [vmem:[#allocation2] sm:$0xff]  ;;  %v1094_v54 = vld [vmem:[#allocation10 + $0x8] sm:$0xff]  ;;  %v1196_v3 = vld [vmem:[#allocation12] ss:$0 sm:$0xff]  ;;  %p1080_p1 = scmp.ne.s32.totalorder %s1539_s29, 7 }
  0x3f   : > { %v547_v11 = vpack.c.bf16 %v545_v9, %v545_v9  ;;  %vm534_vm4 = vcmp.ge.s32.totalorder %v526_v16, 64  ;;  %vm535_vm5 = vcmp.lt.s32.totalorder %v526_v16, 96  ;;  %v1092_v55 = vld [vmem:[#allocation9 + $0x8] sm:$0xff]  ;;  %717 = vmatpush.bf16.msra.mxu2 %v1094_v54  ;;  %v1093_v56 = vld [vmem:[#allocation10] sm:$0xff] }
  0x40   : > { %575 = vmatpush.bf16.msra.mxu0 %v1089_v8  ;;  %v546_v14 = vld [vmem:[#allocation3] sm:$0xff]  ;;  %vm1658_vm6 = vmand %vm534_vm4, %vm535_vm5  ;;  %v688_v57 = vld [vmem:[#allocation2 + $0x8] sm:$0xff]  ;;  %748 = vmatpush.bf16.msra.mxu3 %v1092_v55 }
  0x41   : > { %614 = vmatpush.bf16.msra.mxu1 %v1087_v10  ;;  %652 = vrot.lane.b32.xlu1 %v546_v14, %s1444_s23  ;;  %v691_v59 = vpack.c.bf16 %v688_v57, %v688_v57  ;;  %v690_v63 = vld [vmem:[#allocation3 + $0x8] sm:$0xff] }
  0x43   : > { %1031 = vmatmul.msk.bf16.vlgmr.msra.gmra.mxu0 %vm564_vm1, %v547_v11  ;;  %718 = vmatpush.bf16.msra.mxu2 %v1093_v56 }
  0x44   : > { %749 = vmatpush.bf16.msra.mxu3 %v1091_v58 }
  0x45   : > { %615 = vmatpush.bf16.msra.mxu1 %v1086_v12 }
  0x46   : > { %1059 = vmatmul.msk.bf16.vlgmr.msra.gmra.mxu2 %vm564_vm1, %v691_v59 }
  0x49   : > { %616 = vmatpush.bf16.msra.mxu1 %v1085_v13 }
  0xaf   : > { %v529_v17 = vpop.permute.xlu0 %528 }
  0xb0   : > { %vm530_vm2 = vcmp.eq.s32.totalorder %v526_v16, %v529_v17 }
  0xb1   : > { %v1022_v19 = vsel %vm530_vm2, 1.0, %v1445_v18 }
  0xb2   : > { %v533_v20 = vpack.c.bf16 %v1022_v19, %v1022_v19 }
  0xb3   : > { %v653_v49 = vpop.permute.xlu1 %652 }
  0xb4   : > { %1048 = vmatmul.msk.bf16.vlgmr.msra.gmra.mxu1 %vm605_vm3, %v533_v20 }
  0xc0   : > { %v577_v21 = vpop.f32.mrf.mxu0 }
  0xc8   : > { %v579_v22 = vpop.f32.mrf.mxu0 }
  0xc9   : > { %v720_v1 = vpop.f32.mrf.mxu2 }
  0xd1   : > { %v722_v2 = vpop.f32.mrf.mxu2 }
 0x131   : > { %v618_v24 = vpop.f32.mrf.mxu1 }
 0x132   : > { %v619_v25 = vadd.f32 %v618_v24, %v577_v21 }
 0x134   : > { %v626_v26 = vadd.f32 %v1195_v23, %v619_v25 }
 0x136   : > { %v627_v28 = vmul.f32 2.0, %v626_v26 }
 0x138   : > { %v628_v29 = vsel %vm1658_vm6, %v627_v28, %v626_v26 }
 0x139   : > { %v1049_v30 = vmul.f32 -1.442695, %v628_v29  ;;  %v620_v31 = vpop.f32.mrf.mxu1 }
 0x13b   : > { %1198 = vpow2.f32 %v1049_v30 }
 0x141   : > { %v1199_v32 = vpop.eup %1198 }
 0x142   : > { %v632_v33 = vadd.f32 1.0, %v1199_v32 }
 0x144   : > { %1200 = vrcp.f32 %v632_v33  ;;  %v644_v37 = vand.u32 2147483648, %v632_v33  ;;  %v642_v39 = vand.u32 2147483647, %v632_v33  ;;  %vm638_vm8 = vweird.f32 %v632_v33 }
 0x146   : > { %v645_v41 = vor.u32 1.1754944e-38, %v644_v37  ;;  %vm643_vm10 = vcmp.eq.f32.partialorder %v642_v39, 8.507059e+37 }
 0x14a   : > { %v1201_v34 = vpop.eup %1200 }
 0x14b   : > { %v634_v35 = vmul.f32 %v1201_v34, %v632_v33  ;;  %vm639_vm7 = vweird.f32 %v1201_v34 }
 0x14c   : > { %vm640_vm9 = vmor %vm638_vm8, %vm639_vm7 }
 0x14d   : > { %v635_v36 = vsub.f32 1.0, %v634_v35  ;;  %v1096_v35 = vld [vmem:[%s1764_s9 + $0x8] sm:$0xff] }
 0x14e   : > { %848 = vmatpush.bf16.msrb.mxu0 %v1096_v35 }
 0x14f   : > { %v636_v38 = vmul.f32 %v1201_v34, %v635_v36  ;;  %v1095_v36 = vld [vmem:[%s1764_s9] sm:$0xff] }
 0x151   : > { %v637_v40 = vadd.f32 %v1201_v34, %v636_v38 }
 0x152   : > { %849 = vmatpush.bf16.msrb.mxu0 %v1095_v36 }
 0x153   : > { %v641_v42 = vsel %vm640_vm9, %v1201_v34, %v637_v40 }
 0x154   : > { %v646_v43 = vsel %vm643_vm10, %v645_v41, %v641_v42 }
 0x155   : > { %v648_v44 = vmul.f32 2.0, %v646_v43 }
 0x157   : > { %v1050_v45 = vadd.f32 -1.0, %v648_v44 }
 0x159   : > { %v650_v46 = vsel %vm1658_vm6, %v1050_v45, %v646_v43  ;;  %v1197_v43 = vld [vmem:[%s1765_s10] ss:$0 sm:$0xff] }
 0x15a   : > { %657 = vrot.lane.b32.xlu0 %v650_v46, %s1446_s5  ;;  %v655_v50 = vmul.f32 %v653_v49, %v650_v46 }
 0x1cc   : > { %v658_v47 = vpop.permute.xlu0 %657 }
 0x1cd   : > { %v660_v48 = vmul.f32 %v658_v47, %v650_v46 }
 0x1cf   : > { %662 = vrot.lane.b32.xlu1 %v660_v48, %s1444_s23 }
 0x1d7   : > { %785 = vrot.lane.b32.xlu1 %v690_v63, %s1444_s23 }
 0x241   : > { %v663_v51 = vpop.permute.xlu1 %662 }
 0x242   : > { %v1668_v52 = vadd.f32 %v663_v51, %v655_v50 }
 0x244   : > { %1202 = vtanh.f32 %v1668_v52 }
 0x249   : > { %v786_v29 = vpop.permute.xlu1 %785 }
 0x24a   : > { %v1203_v53 = vpop.eup %1202 }
 0x24b   : > { %668 = vrot.lane.b32.xlu2 %v1203_v53, %s1446_s5 }
 0x2a5   : > { %v669_v60 = vpop.permute.xlu2 %668 }
 0x2a6   : > { %v671_v61 = vmul.f32 %v669_v60, %v650_v46 }
 0x2a8   : > { %v682_v62 = vpack.c.bf16 %v671_v61, %v671_v61 }
 0x2aa   : > { %725 = vrot.lane.b32.xlu2 %v682_v62, %s1444_s23 }
 0x304   : > { %v726_v0 = vpop.permute.xlu2 %725 }
 0x305   : > { %1068 = vmatmul.msk.bf16.vlgmr.msra.gmra.mxu3 %vm564_vm1, %v726_v0 }
 0x388   : > { %v751_v4 = vpop.f32.mrf.mxu3 }
 0x389   : > { %v752_v5 = vadd.f32 %v751_v4, %v720_v1 }
 0x38b   : > { %v759_v6 = vadd.f32 %v1196_v3, %v752_v5 }
 0x38d   : > { %v760_v7 = vmul.f32 2.0, %v759_v6 }
 0x38f   : > { %v761_v8 = vsel %vm1658_vm6, %v760_v7, %v759_v6 }
 0x390   : > { %v1069_v9 = vmul.f32 -1.442695, %v761_v8  ;;  %v753_v10 = vpop.f32.mrf.mxu3 }
 0x392   : > { %1204 = vpow2.f32 %v1069_v9 }
 0x398   : > { %v1205_v11 = vpop.eup %1204 }
 0x399   : > { %v765_v12 = vadd.f32 1.0, %v1205_v11 }
 0x39b   : > { %1206 = vrcp.f32 %v765_v12  ;;  %v777_v16 = vand.u32 2147483648, %v765_v12  ;;  %v775_v18 = vand.u32 2147483647, %v765_v12  ;;  %vm771_vm12 = vweird.f32 %v765_v12 }
 0x39d   : > { %v778_v20 = vor.u32 1.1754944e-38, %v777_v16  ;;  %vm776_vm14 = vcmp.eq.f32.partialorder %v775_v18, 8.507059e+37 }
 0x3a1   : > { %v1207_v13 = vpop.eup %1206 }
 0x3a2   : > { %v767_v14 = vmul.f32 %v1207_v13, %v765_v12  ;;  %vm772_vm11 = vweird.f32 %v1207_v13 }
 0x3a3   : > { %vm773_vm13 = vmor %vm771_vm12, %vm772_vm11 }
 0x3a4   : > { %v768_v15 = vsub.f32 1.0, %v767_v14 }
 0x3a6   : > { %v769_v17 = vmul.f32 %v1207_v13, %v768_v15 }
 0x3a8   : > { %v770_v19 = vadd.f32 %v1207_v13, %v769_v17 }
 0x3aa   : > { %v774_v21 = vsel %vm773_vm13, %v1207_v13, %v770_v19 }
 0x3ab   : > { %v779_v22 = vsel %vm776_vm14, %v778_v20, %v774_v21 }
 0x3ac   : > { %v781_v23 = vmul.f32 2.0, %v779_v22 }
 0x3ae   : > { %v1070_v24 = vadd.f32 -1.0, %v781_v23 }
 0x3b0   : > { %v783_v25 = vsel %vm1658_vm6, %v1070_v24, %v779_v22 }
 0x3b1   : > { %790 = vrot.lane.b32.xlu0 %v783_v25, %s1446_s5  ;;  %v788_v30 = vmul.f32 %v786_v29, %v783_v25 }
 0x423   : > { %v791_v26 = vpop.permute.xlu0 %790 }
 0x424   : > { %v793_v28 = vmul.f32 %v791_v26, %v783_v25 }
 0x426   : > { %795 = vrot.lane.b32.xlu2 %v793_v28, %s1444_s23 }
 0x42e   : > { %673 = vrot.lane.b32.xlu2 %v671_v61, %s1444_s23 }
 0x480   : > { %v796_v31 = vpop.permute.xlu2 %795 }
 0x481   : > { %v798_v32 = vadd.f32 %v796_v31, %v788_v30 }
 0x483   : > { %1208 = vtanh.f32 %v798_v32  ;;  %811 = vrot.lane.b32.xlu2 %v798_v32, %s1447_s30 }
 0x488   : > { %v674_v33 = vpop.permute.xlu2 %673 }
 0x489   : > { %v1209_v34 = vpop.eup %1208  ;;  %676 = vst.msk [vmem:[#allocation2] sm:$0xff] %vm564_vm1, %v674_v33 }
 0x48a   : > { %801 = vrot.lane.b32.xlu0 %v1209_v34, %s1446_s5 }
 0x492   : > { %678 = vrot.lane.b32.xlu0 %v1668_v52, %s1447_s30 }
 0x4dd   : > { %v812_v27 = vpop.permute.xlu2 %811 }
 0x4de   : > { %814 = vst.msk [vmem:[#allocation3 + $0x8] sm:$0xff] %vm564_vm1, %v812_v27 }
 0x4fc   : > { %v802_v37 = vpop.permute.xlu0 %801 }
 0x4fd   : > { %v804_v38 = vmul.f32 %v802_v37, %v783_v25 }
 0x4ff   : > { %v815_v39 = vpack.c.bf16 %v804_v38, %v804_v38 }
 0x501   : > { %825 = vrot.lane.b32.xlu1 %v815_v39, %s1444_s23 }
 0x504   : > { %v679_v40 = vpop.permute.xlu0 %678 }
 0x505   : > { %681 = vst.msk [vmem:[#allocation3] sm:$0xff] %vm564_vm1, %v679_v40 }
 0x509   : > { %806 = vrot.lane.b32.xlu1 %v804_v38, %s1444_s23 }
 0x573   : > { %v826_v41 = vpop.permute.xlu1 %825 }
 0x574   : > { %1079 = vmatmul.msk.bf16.vlgmr.msrb.gmra.mxu0 %vm564_vm1, %v826_v41 }
 0x57b   : > { %v807_v42 = vpop.permute.xlu1 %806 }
 0x57c   : > { %809 = vst.msk [vmem:[#allocation2 + $0x8] sm:$0xff] %vm564_vm1, %v807_v42 }
 0x5f1   : > { %v851_v44 = vpop.f32.mrf.mxu0 }
 0x5f2   : > { %v852_v45 = vadd.f32 %v1197_v43, %v851_v44 }
 0x5f4   : > { %855 = vst [vmem:[%s501_s15] sm:$0xff] %v852_v45 }
 0x5f5   : > { %859 = sbr.rel (%p1080_p1) target bundleno = 1535 (0x5ff), region = 92 }
 0x5f9   : > { %v853_v46 = vpop.f32.mrf.mxu0 }
 0x5fa   : > { %v860_v47 = vld [vmem:[#allocation2] sm:$0xff]  ;;  %v861_v48 = vld [vmem:[#allocation2 + $0x8] sm:$0xff]  ;;  %v864_v49 = vld [vmem:[#allocation3] sm:$0xff] }
 0x5fb   : > { %862 = vst.msk [vmem:[%s1767_s12] sm:$0xff] %vm564_vm1, %v860_v47  ;;  %v865_v50 = vld [vmem:[#allocation3 + $0x8] sm:$0xff] }
 0x5fc   : > { %863 = vst.msk [vmem:[%s1767_s12 + $0x8] sm:$0xff] %vm564_vm1, %v861_v48 }
 0x5fd   : > { %866 = vst.msk [vmem:[%s1768_s13] sm:$0xff] %vm564_vm1, %v864_v49 }
 0x5fe   : > { %867 = vst.msk [vmem:[%s1768_s13 + $0x8] sm:$0xff] %vm564_vm1, %v865_v50 }
 0x5ff PF: > { %s1082_s21 = sshll.u32 %s1539_s29, 3  ;;  %s881_s25 = sshll.u32 %s501_s15, 4  ;;  %s882_s25 = int_to_ptr.vmem [resolvable:$true] %s881_s25 }
 0x600   : > { %s879_s22 = scalar_lea.hbm %s1766_s11, %s1082_s21  ;;  %s869_s14 = scalar_lea.sflag [#allocation6], %s499_s4 }
 0x601   : > { %s883_s28 = sshll.u32 %s879_s22, 4  ;;  %s1380_s16 = scalar_lea.hbm %s1766_s11, 64  ;;  %s884_s28 = int_to_ptr.hbm [resolvable:$true] %s883_s28 }
 0x602   : > { %s1374_s19 = sshra.s32 %s884_s28, 4  ;;  %s1375_s19 = int_to_ptr.hbm [resolvable:$true] %s1374_s19 }
 0x603   : > { %s1376_s20 = scalar_lea.hbm %s1375_s19, 8  ;;  %p1381_p7 = scmp.lt.s32.totalorder %s1375_s19, %s1766_s11 }
 0x604   : > { %p1377_p2 = scmp.ne.s32.totalorder %s1375_s19, %s1376_s20  ;;  %p1382_p8 = scmp.lt.s32.totalorder %s1380_s16, %s1376_s20 }
 0x606   : > { %p1378_p3 = pnand %p1377_p2, %p1556_p5  ;;  %p1383_p9 = por %p1382_p8, %p1381_p7 }
 0x608   : > { %p1379_p4 = pneg %p1378_p3 }
 0x60a   : > { %p1384_p10 = pnand %p1383_p9, %p1379_p4 }
 0x60c   : > { %1387 = shalt.err (!%p1384_p10)
}
 0x60d   : > { %1117 = dma.vmem_to_hbm [thread:$0]  (%p1556_p5), %s882_s25, 128, %s884_s28, %s869_s14  }
 0x60e PF: > { %s1793_s4 = sld [smem:[#allocation20_spill]] }
 0x60f   : > { %s1794_s7 = sld [smem:[#allocation18_spill]] }
 0x614   : > { %p1149_p11 = scmp.ge.s32.totalorder %s1793_s4, 2 }
 0x615   : > { %s907_s30 = sand.u32 1, %s1794_s7  }
 0x616   : > { %p1136_p12 = pnand %p1149_p11, %p1560_p6  ;;  %s908_s21 = scalar_lea.sflag [#allocation6], %s907_s30 }
 0x618   : > { %p1137_p13 = pneg %p1136_p12 }
 0x61a   : > { %1417 = dma.done.wait (%p1137_p13), %s908_s21, 128  }
 0x61b   : > { %1419 = vsyncadd (%p1137_p13), %s908_s21, 4294967168  ;;  %s1796_s28 = sld [smem:[#allocation21_spill]]  ;;  %s1799_s25 = smov %s1426_s26 }
 0x61c   : > { %s1797_s24 = sld [smem:[#allocation19_spill]] }
 0x61d   : > { %s1798_s27 = sld [smem:[#allocation22_spill]] }
 0x621   : > { %p27_p0 = scmp.ge.s32.totalorder %s1796_s28, 10  }
 0x622   : > { %s1800_s26 = smov %s1797_s24 }
 0x623   :  { %29 = sbr.rel (!%p27_p0) target bundleno = 10 (0xa), region = 146 }
 0x628   :  { %914 = vsyncpa [#allocation5], 1 }
 0x629   :  { %916 = vsyncpa [#allocation5 + $0x1], 1 }
 0x62a   :  { %917 = vsyncpa [#allocation8], 1 }
 0x62b   :  { %918 = vsyncpa [#allocation11], 1 }
 0x62c   :  { %919 = vsyncpa [#allocation6], 1 }
 0x62d   :  { %921 = vsyncpa [#allocation6 + $0x1], 1 }

</bundles_post_ra>
